<compile_context>
chip_gen: v7x
topology: tpu7x:2x2x1
jax: 0.10.0
libtpu: 0.0.40
codegen_flags: <defaults>
</compile_context>

<pallas_src>
import functools

import jax
import jax.numpy as jnp
from jax.experimental import pallas as pl
from jax.experimental.pallas import tpu as pltpu


def _scaled_tanh_kernel(x_ref, o_ref, *, scaler):
    # Elementwise hot path: scale on the VPU, tanh on the EUP.
    o_ref[...] = jnp.tanh(scaler * x_ref[...])


def _lane_dense_view(n_elems):
    """Pick a (rows, cols) 2D view of a 128-aligned flat size, lane-dense."""
    for cols in (1024, 512, 256, 128):
        if n_elems % cols == 0:
            return n_elems // cols, cols
    raise ValueError("n_elems must be a multiple of 128")


def _scaled_tanh_2d(x2d, scaler, *, target_block_bytes, split_bytes,
                    vmem_limit_bytes, input_buffers):
    """Run the kernel on a lane-dense (rows, cols) view (cols % 128 == 0)."""
    rows, cols = x2d.shape
    dtype = x2d.dtype
    itemsize = jnp.dtype(dtype).itemsize
    total_bytes = rows * cols * itemsize
    n = rows * cols

    # dtype-native sublane multiple: 8 (f32), 16 (bf16), 32 (int8/fp8).
    min_rows = max(8, 32 // itemsize)

    block_rows = max(min_rows,
                     (target_block_bytes // (cols * itemsize)) // min_rows * min_rows)

    if block_rows >= rows:
        if total_bytes >= split_bytes and rows >= 2 * min_rows:
            # Tensor is big enough to care: force >= 2 grid steps so the
            # "parallel" grid axis shards across both TensorCores on v7x.
            half = (rows + 1) // 2
            block_rows = ((half + min_rows - 1) // min_rows) * min_rows
            grid = (pl.cdiv(rows, block_rows),)
        else:
            # Small tensor: single full-extent block (always a legal layout).
            block_rows = rows
            grid = (1,)
    else:
        grid = (pl.cdiv(rows, block_rows),)  # last block may overhang; OOB writes dropped

    cost = pl.CostEstimate(
        flops=n,                      # one multiply per element
        transcendentals=n,            # one tanh per element
        bytes_accessed=2 * n * itemsize,
    )

    # Optional deeper input pipelining (e.g. 3 buffers on v7x if trace shows
    # exposed DMA gaps). Default 2 = standard double buffering.
    if input_buffers > 2:
        in_spec = pl.BlockSpec((block_rows, cols), lambda i: (i, 0),
                               pipeline_mode=pl.Buffered(input_buffers))
    else:
        in_spec = pl.BlockSpec((block_rows, cols), lambda i: (i, 0))

    return pl.pallas_call(
        functools.partial(_scaled_tanh_kernel, scaler=scaler),
        out_shape=jax.ShapeDtypeStruct((rows, cols), dtype),
        grid=grid,
        in_specs=[in_spec],
        out_specs=pl.BlockSpec((block_rows, cols), lambda i: (i, 0)),
        compiler_params=pltpu.CompilerParams(
            dimension_semantics=("parallel",),
            vmem_limit_bytes=vmem_limit_bytes,  # headroom; footprint ~16 MiB max
        ),
        cost_estimate=cost,
    )(x2d)


def scaled_tanh(x, scaler=2.0, *, target_block_bytes=4 << 20,
                split_bytes=2 << 20, vmem_limit_bytes=32 * 1024 * 1024,
                input_buffers=2):
    """y = tanh(scaler * x), elementwise, same shape/dtype as x."""
    orig_shape = x.shape
    n = int(x.size)
    if n == 0:
        return x

    n_main = (n // 128) * 128
    if n_main == 0:
        # <128 elements total: lane-dense tiling impossible; trivially cheap.
        return jnp.tanh(scaler * x)

    kwargs = dict(target_block_bytes=target_block_bytes, split_bytes=split_bytes,
                  vmem_limit_bytes=vmem_limit_bytes, input_buffers=input_buffers)

    if n_main == n:
        rows, cols = _lane_dense_view(n)
        out2d = _scaled_tanh_2d(x.reshape(rows, cols), scaler, **kwargs)
        return out2d.reshape(orig_shape)

    # n not a multiple of 128: run the kernel lane-dense on the 128-aligned
    # prefix; handle the <128-element tail with plain jnp (no extra HBM pass
    # over the bulk of the data).
    flat = x.reshape(-1)
    rows, cols = _lane_dense_view(n_main)
    main = _scaled_tanh_2d(flat[:n_main].reshape(rows, cols), scaler, **kwargs)
    tail = jnp.tanh(scaler * flat[n_main:])
    return jnp.concatenate([main.reshape(-1), tail]).reshape(orig_shape)


if __name__ == "__main__":
    key = jax.random.PRNGKey(0)
    scaler = 2.0

    # Primary: small NCHW input consistent with the module's intended use.
    x = jax.random.normal(key, (2, 4, 16, 16), dtype=jnp.float32)
    y = scaled_tanh(x, scaler=scaler)
    jax.block_until_ready(y)
    y_ref = jnp.tanh(scaler * x)
    assert y.shape == x.shape and y.dtype == x.dtype
    assert jnp.max(jnp.abs(y - y_ref)) < 1e-5

    # Ragged final block (rows % block_rows != 0) with a small block budget.
    k1, k2 = jax.random.split(key)
    x2 = jax.random.normal(k1, (200, 128), dtype=jnp.float32)
    y2 = scaled_tanh(x2, scaler=scaler, target_block_bytes=64 * 1024)
    jax.block_until_ready(y2)
    assert jnp.max(jnp.abs(y2 - jnp.tanh(scaler * x2))) < 1e-5

    # Non-multiple-of-128 size: aligned-prefix kernel + jnp tail path.
    x3 = jax.random.normal(k2, (2, 67), dtype=jnp.float32)
    y3 = scaled_tanh(x3, scaler=scaler)
    jax.block_until_ready(y3)
    assert jnp.max(jnp.abs(y3 - jnp.tanh(scaler * x3))) < 1e-5

    print("KERNEL_OK")
</pallas_src>

<mosaic_0001>
module attributes {stable_mosaic.version = 11 : i64} {
  func.func @_scaled_tanh_kernel(%arg0: i32, %arg1: memref<2x1024xf32, #tpu.memory_space<vmem>>, %arg2: memref<2x1024xf32, #tpu.memory_space<vmem>>) attributes {dimension_semantics = [#tpu.dimension_semantics<parallel>], iteration_bounds = array<i64: 1>, scalar_prefetch = 0 : i64, scratch_operands = 0 : i64, tpu.core_type = #tpu.core_type<tc>, window_params = [{transform_indices = @transform_0, window_bounds = array<i64: 2, 1024>}, {transform_indices = @transform_1, window_bounds = array<i64: 2, 1024>}]} {
    %c0 = arith.constant 0 : index
    %c0_0 = arith.constant 0 : index
    %0 = vector.load %arg1[%c0, %c0_0] : memref<2x1024xf32, #tpu.memory_space<vmem>>, vector<2x1024xf32>
    %cst = arith.constant 2.000000e+00 : f32
    %1 = vector.broadcast %cst : f32 to vector<2x1024xf32>
    %2 = arith.mulf %1, %0 : vector<2x1024xf32>
    %3 = math.tanh %2 : vector<2x1024xf32>
    %c0_1 = arith.constant 0 : index
    %c0_2 = arith.constant 0 : index
    %4 = vector.load %arg2[%c0_1, %c0_2] : memref<2x1024xf32, #tpu.memory_space<vmem>>, vector<2x1024xf32>
    tpu.vector_store %arg2[%c0_1, %c0_2], %3 {strides = array<i32>} : memref<2x1024xf32, #tpu.memory_space<vmem>>, vector<2x1024xf32>,
    return
  }
  func.func @transform_0(%arg0: i32) -> (i32, i32) {
    %c0_i32 = arith.constant 0 : i32
    %c0_i32_0 = arith.constant 0 : i32
    return %arg0, %c0_i32 : i32, i32
  }
  func.func @transform_1(%arg0: i32) -> (i32, i32) {
    %c0_i32 = arith.constant 0 : i32
    %c0_i32_0 = arith.constant 0 : i32
    return %arg0, %c0_i32 : i32, i32
  }
}

</mosaic_0001>

<bundles_post_ra>
// kernel: tpu_custom_call.1
= control target key start
LH: loop header
LB: loop body
LE: loop exit
PB: predicated region body
PF: predicated region fallthrough
CT: control target
= control target key end

     0   :  { %6 = vsyncpa [#allocation3], 0  ;;  %s134_s0 = inlined_call_operand.hbm [shape: f32[2,1024], index: 0, kind: input, shape index: {}]   ;;  %s135_s1 = inlined_call_operand.hbm [shape: f32[2,1024], index: 1, kind: output, shape index: {}]  }
   0x1   :  { %7 = vsyncpa [#allocation4], 0  ;;  %s98_s6 = smov [#allocation2]   ;;  %s50_s10 = scalar_lea.hbm %s134_s0, 256 }
   0x2   :  { %s14_s7 = sshll.u32 %s98_s6, 4  ;;  %p51_p0 = scmp.ne.s32.totalorder %s134_s0, %s50_s10  ;;  %s15_s7 = int_to_ptr.vmem [resolvable:$true] %s14_s7 }
   0x3   :  { %p54_p1 = scmp.lt.u32.totalorder %s50_s10, %s134_s0 }
   0x5   :  { %p56_p2 = pnand %p54_p1, %p51_p0 }
   0x7   :  { %59 = shalt.err (!%p56_p2)
}
   0x8   :  { %s60_s15 = scalar_lea.vmem %s15_s7, 256  ;;  %p65_p4 = scmp.lt.s32.totalorder %s15_s7, %s15_s7 }
   0x9   :  { %p61_p3 = scmp.ne.s32.totalorder %s15_s7, %s60_s15  ;;  %p66_p5 = scmp.lt.s32.totalorder %s60_s15, %s60_s15 }
   0xb   :  { %p67_p6 = por %p66_p5, %p65_p4 }
   0xd   :  { %p68_p7 = pnand %p67_p6, %p61_p3 }
   0xf   :  { %71 = shalt.err (!%p68_p7)
}
  0x10   :  { %17 = dma.hbm_to_vmem [thread:$0]  %s134_s0, 256, %s15_s7, [#allocation3]  }
  0x11   :  { %94 = dma.done.wait [#allocation3], 256  }
  0x12   :  { %95 = vsyncadd [#allocation3], 4294967040  ;;  %v21_v0 = vld [vmem:[#allocation2] sm:$0xff]  ;;  %v22_v1 = vld [vmem:[#allocation2 + $0x8] sm:$0xff]  ;;  %s99_s18 = smov [#allocation5]  }
  0x13   :  { %v23_v2 = vmul.f32 2.0, %v21_v0  ;;  %v24_v3 = vmul.f32 2.0, %v22_v1  ;;  %s35_s19 = sshll.u32 %s99_s18, 4  ;;  %s36_s19 = int_to_ptr.vmem [resolvable:$true] %s35_s19 }
  0x14   :  { %s72_s20 = scalar_lea.vmem %s36_s19, 256  ;;  %p77_p9 = scmp.lt.s32.totalorder %s36_s19, %s36_s19 }
  0x15   :  { %46 = vtanh.f32 %v23_v2  ;;  %p73_p8 = scmp.ne.s32.totalorder %s36_s19, %s72_s20  ;;  %p78_p10 = scmp.lt.s32.totalorder %s72_s20, %s72_s20 }
  0x16   :  { %48 = vtanh.f32 %v24_v3 }
  0x17   :  { %p79_p11 = por %p78_p10, %p77_p9 }
  0x19   :  { %p80_p12 = pnand %p79_p11, %p73_p8 }
  0x1f   :  { %v47_v4 = vpop.eup %46 }
  0x20   :  { %v49_v5 = vpop.eup %48  ;;  %27 = vst [vmem:[#allocation5] sm:$0xff] %v47_v4 }
  0x21   :  { %28 = vst [vmem:[#allocation5 + $0x8] sm:$0xff] %v49_v5 }
  0x22   :  { %83 = shalt.err (!%p80_p12)
}
  0x23   :  { %s84_s22 = scalar_lea.hbm %s135_s1, 256 }
  0x24   :  { %p85_p13 = scmp.ne.s32.totalorder %s135_s1, %s84_s22  ;;  %p88_p0 = scmp.lt.u32.totalorder %s84_s22, %s135_s1 }
  0x26   :  { %p90_p1 = pnand %p88_p0, %p85_p13 }
  0x28   :  { %93 = shalt.err (!%p90_p1)
}
  0x29   :  { %38 = dma.vmem_to_hbm [thread:$0]  %s36_s19, 256, %s135_s1, [#allocation4]  }
  0x2a   :  { %96 = dma.done.wait [#allocation4], 256  }
  0x2b   :  { %97 = vsyncadd [#allocation4], 4294967040 }
  0x2c   :  { %42 = vsyncpa [#allocation3], 1 }
  0x2d   :  { %43 = vsyncpa [#allocation4], 1 }

</bundles_post_ra>
